<compile_context>
chip_gen: v5e
topology: v5e:2x2
jax: 0.10.0
libtpu: 0.0.40
codegen_flags: <defaults>
</compile_context>

<pallas_src>
import math

import jax
import jax.numpy as jnp
from jax.experimental import pallas as pl
from jax.experimental.pallas import tpu as pltpu


LANE = 128  # TPU lane width; pad feature dims to a multiple of this.


def _round_up(n, m):
    return ((n + m - 1) // m) * m


def _cdiv(a, b):
    return (a + b - 1) // b


def _quick_gelu(x):
    # QuickGELU(x) = x * sigmoid(1.702 * x).  Stays on VPU/EUP in f32.
    return x * jax.nn.sigmoid(1.702 * x)


def _vmem_ceiling_bytes():
    """Physical VMEM capacity minus ~25% headroom; safe fallback if unknown."""
    try:
        cap = int(pltpu.get_tpu_info().vmem_capacity_bytes)
    except Exception:
        cap = 64 << 20
    return (cap * 3) // 4


def _netdenoise_kernel(
    x_ref, t_ref,
    w1x_ref, w1t_ref, b1_ref,
    w2x_ref, w2t_ref, b2_ref,
    w3x_ref, w3t_ref, b3_ref,
    w4x_ref, w4t_ref, b4_ref,
    out_ref,
):
    x = x_ref[...]            # (TB, H)   bf16 (streamed narrow)
    t = t_ref[...]            # (TB, 1)   f32

    def layer(h, wx_ref, wt_ref, b_ref, act):
        wx = wx_ref[...]                                    # (K, Np) bf16/f32, VMEM-resident
        # MXU: bf16 x bf16 -> f32 accumulate.
        z = jnp.dot(h.astype(wx.dtype), wx,
                    preferred_element_type=jnp.float32)
        # Epilogue stays f32 (v5e has no bf16 VPU/EUP; accurate everywhere).
        z = z + t * wt_ref[...] + b_ref[...]
        return _quick_gelu(z) if act else z

    h = layer(x, w1x_ref, w1t_ref, b1_ref, True)    # fc1: H      -> H//4  (lane-padded)
    h = layer(h, w2x_ref, w2t_ref, b2_ref, True)    # fc2: H//4   -> H//16 (lane-padded)
    h = layer(h, w3x_ref, w3t_ref, b3_ref, True)    # fc3: H//16  -> H//4  (lane-padded)
    h = layer(h, w4x_ref, w4t_ref, b4_ref, False)   # fc4: H//4   -> H     (lane-padded)

    out_ref[...] = h.astype(out_ref.dtype)


def netdenoise_pallas(x, t, params, *, block_b=1024):
    """x: (B, H) float32, t: (B,) float32, params: dict from init_params."""
    B, H = x.shape
    H4p = params["w1x"].shape[1]
    H16p = params["w2x"].shape[1]
    Hp = params["w4x"].shape[1]          # lane-padded output width of fc4

    # Grid-step count: ceil(B / block_b), but (a) >= 2 so v7x's 2 TensorCores both
    # get work under dimension_semantics=("parallel",), (b) even so the megacore
    # split stays balanced.  Each extra step is only ~0.35 us on 1-TC chips.
    n_steps = max(1, _cdiv(B, block_b))
    if B > 16:
        n_steps = max(n_steps, 2)
    if n_steps > 1 and (n_steps % 2):
        n_steps += 1
    # Batch tile: multiple of 16 rows (bf16 sublane packing).
    TB = _round_up(_cdiv(B, n_steps), 16)
    Bp = TB * n_steps

    # Stream x as bf16 (it is cast to bf16 for the first matmul anyway).
    xp = x.astype(jnp.bfloat16)
    tp = t.reshape(B, 1).astype(jnp.float32)
    if Bp != B:
        xp = jnp.pad(xp, ((0, Bp - B), (0, 0)))
        tp = jnp.pad(tp, ((0, Bp - B), (0, 0)))

    weight_args = (
        params["w1x"], params["w1t"], params["b1"],
        params["w2x"], params["w2t"], params["b2"],
        params["w3x"], params["w3t"], params["b3"],
        params["w4x"], params["w4t"], params["b4"],
    )

    # x / t / out: batch-tiled, software-pipelined across the grid.
    # Weights: whole-array VMEM residents -> one copy, loaded once, no
    # double-buffering, never re-fetched across grid steps.
    w_spec = pl.BlockSpec(memory_space=pltpu.MemorySpace.VMEM)
    in_specs = [
        pl.BlockSpec((TB, H), lambda i: (i, 0)),
        pl.BlockSpec((TB, 1), lambda i: (i, 0)),
    ] + [w_spec] * len(weight_args)
    out_spec = pl.BlockSpec((TB, Hp), lambda i: (i, 0))

    # Cost estimate (helps XLA schedule/overlap this call inside a larger jit).
    flops = int(2 * Bp * (H * H4p + H4p * H16p + H16p * H4p + H4p * Hp))
    transcendentals = int(Bp * (H4p + H16p + H4p))   # one sigmoid per gelu lane
    weight_bytes = sum(int(w.size) * int(jnp.dtype(w.dtype).itemsize)
                       for w in weight_args)
    bytes_accessed = int(weight_bytes + xp.nbytes + tp.nbytes + Bp * Hp * 4)
    cost = pl.CostEstimate(flops=flops, transcendentals=transcendentals,
                           bytes_accessed=bytes_accessed)

    # VMEM budget: double-buffered x/t/out blocks + single-copy resident weights
    # + largest live intermediates + headroom, capped generation-aware.
    block_io_bytes = TB * H * 2 + TB * 4 + TB * Hp * 4          # bf16 x, f32 t/out
    act_bytes = TB * (H4p + H16p) * 4
    vmem_budget = 2 * block_io_bytes + weight_bytes + act_bytes + (4 << 20)
    vmem_limit = int(min(_vmem_ceiling_bytes(), max(32 << 20, vmem_budget)))

    out = pl.pallas_call(
        _netdenoise_kernel,
        out_shape=jax.ShapeDtypeStruct((Bp, Hp), jnp.float32),
        grid=(n_steps,),
        in_specs=in_specs,
        out_specs=out_spec,
        compiler_params=pltpu.CompilerParams(
            dimension_semantics=("parallel",),
            vmem_limit_bytes=vmem_limit,
        ),
        cost_estimate=cost,
    )(xp, tp, *weight_args)

    if Bp == B and Hp == H:
        return out
    return out[:B, :H]


def init_params(key, H, *, weight_dtype=jnp.bfloat16):
    """Deterministic init mimicking nn.Linear (uniform +/-1/sqrt(fan_in)).

    PyTorch stores W as (out, in); we store transposed (in, out), split off the
    time column into wt, zero-pad every output width to a multiple of 128 lanes
    (and the matching input rows of the next layer), and keep Wx in
    `weight_dtype` (bf16 by default -> MXU-native); wt / bias stay f32.
    """
    H4, H16 = H // 4, H // 16
    H4p, H16p, Hp = _round_up(H4, LANE), _round_up(H16, LANE), _round_up(H, LANE)

    #       name  in_logical out_logical in_padded out_padded
    dims = [("1", H,         H4,         H,        H4p),
            ("2", H4,        H16,        H4p,      H16p),
            ("3", H16,       H4,         H16p,     H4p),
            ("4", H4,        H,          H4p,      Hp)]

    params = {}
    for name, in_l, out_l, in_p, out_p in dims:
        key, kw, kb = jax.random.split(key, 3)
        fan_in = in_l + 1                       # +1 for the time feature
        bound = 1.0 / math.sqrt(fan_in)
        w_full = jax.random.uniform(kw, (fan_in, out_l), jnp.float32,
                                    -bound, bound)
        b = jax.random.uniform(kb, (out_l,), jnp.float32, -bound, bound)

        wx = jnp.zeros((in_p, out_p), jnp.float32).at[:in_l, :out_l].set(
            w_full[:-1, :])
        wt = jnp.zeros((1, out_p), jnp.float32).at[:, :out_l].set(w_full[-1:, :])
        bp = jnp.zeros((1, out_p), jnp.float32).at[:, :out_l].set(b[None, :])

        params[f"w{name}x"] = wx.astype(weight_dtype)   # MXU operand
        params[f"w{name}t"] = wt                        # f32 (VPU path)
        params[f"b{name}"] = bp                         # f32 (VPU path)
    return params


def netdenoise_ref_split(x, t, params):
    """Pure-JAX reference doing exactly the kernel's math (split + bf16 dot)."""
    t2 = t.reshape(-1, 1).astype(jnp.float32)

    def layer(h, i, act):
        wx = params[f"w{i}x"]
        z = jnp.dot(h.astype(wx.dtype), wx, preferred_element_type=jnp.float32)
        z = z + t2 * params[f"w{i}t"] + params[f"b{i}"]
        return _quick_gelu(z) if act else z

    h = layer(x, 1, True)
    h = layer(h, 2, True)
    h = layer(h, 3, True)
    h = layer(h, 4, False)
    return h[:, :x.shape[1]]


def netdenoise_ref_f32(x, t, params, H):
    """Concatenation-based f32 reference matching the PyTorch forward."""
    H4, H16 = H // 4, H // 16
    ins = {1: H, 2: H4, 3: H16, 4: H4}
    outs = {1: H4, 2: H16, 3: H4, 4: H}
    t2 = t.reshape(-1, 1).astype(jnp.float32)
    h = x
    for i in (1, 2, 3, 4):
        wx = params[f"w{i}x"].astype(jnp.float32)[:ins[i], :outs[i]]
        wt = params[f"w{i}t"][:, :outs[i]]
        b = params[f"b{i}"][:, :outs[i]]
        w = jnp.concatenate([wx, wt], axis=0)
        h = jnp.concatenate([h, t2], axis=1) @ w + b
        if i != 4:
            h = _quick_gelu(h)
    return h


if __name__ == "__main__":
    H = 64
    B = 80          # not a multiple of the batch tile -> exercises padding

    key = jax.random.PRNGKey(0)
    key, kx, kt, kp = jax.random.split(key, 4)
    x = jax.random.normal(kx, (B, H), jnp.float32)
    t = jax.random.uniform(kt, (B,), jnp.float32)
    params = init_params(kp, H)                  # bf16 Wx, lane-padded

    out = netdenoise_pallas(x, t, params)        # grid=(2,): even steps for v7x
    out = jax.block_until_ready(out)

    assert out.shape == (B, H)
    assert bool(jnp.all(jnp.isfinite(out)))

    # Exact check: same math (split form, bf16 MXU operands, f32 accumulate).
    ref_exact = netdenoise_ref_split(x, t, params)
    assert jnp.allclose(out, ref_exact, atol=1e-3, rtol=1e-3)

    # Semantics check vs. the concatenation-based f32 forward (PyTorch form);
    # the only difference is bf16 rounding of the matmul operands.
    ref_f32 = netdenoise_ref_f32(x, t, params, H)
    assert jnp.allclose(out, ref_f32, atol=5e-2, rtol=5e-2)

    print("KERNEL_OK")
</pallas_src>

<mosaic_0001>
module attributes {stable_mosaic.version = 11 : i64} {
  func.func @_netdenoise_kernel(%arg0: i32, %arg1: memref<48x64xbf16, #tpu.memory_space<vmem>>, %arg2: memref<48x1xf32, #tpu.memory_space<vmem>>, %arg3: memref<64x128xbf16, #tpu.memory_space<vmem>>, %arg4: memref<1x128xf32, #tpu.memory_space<vmem>>, %arg5: memref<1x128xf32, #tpu.memory_space<vmem>>, %arg6: memref<128x128xbf16, #tpu.memory_space<vmem>>, %arg7: memref<1x128xf32, #tpu.memory_space<vmem>>, %arg8: memref<1x128xf32, #tpu.memory_space<vmem>>, %arg9: memref<128x128xbf16, #tpu.memory_space<vmem>>, %arg10: memref<1x128xf32, #tpu.memory_space<vmem>>, %arg11: memref<1x128xf32, #tpu.memory_space<vmem>>, %arg12: memref<128x128xbf16, #tpu.memory_space<vmem>>, %arg13: memref<1x128xf32, #tpu.memory_space<vmem>>, %arg14: memref<1x128xf32, #tpu.memory_space<vmem>>, %arg15: memref<48x128xf32, #tpu.memory_space<vmem>>) attributes {dimension_semantics = [#tpu.dimension_semantics<parallel>], iteration_bounds = array<i64: 2>, scalar_prefetch = 0 : i64, scratch_operands = 0 : i64, tpu.core_type = #tpu.core_type<tc>, window_params = [{transform_indices = @transform_0, window_bounds = array<i64: 48, 64>}, {transform_indices = @transform_1, window_bounds = array<i64: 48, 1>}, {pipeline_mode = #tpu.pipeline_mode<synchronous>, transform_indices = @transform_2, window_bounds = array<i64: 64, 128>}, {pipeline_mode = #tpu.pipeline_mode<synchronous>, transform_indices = @transform_3, window_bounds = array<i64: 1, 128>}, {pipeline_mode = #tpu.pipeline_mode<synchronous>, transform_indices = @transform_4, window_bounds = array<i64: 1, 128>}, {pipeline_mode = #tpu.pipeline_mode<synchronous>, transform_indices = @transform_5, window_bounds = array<i64: 128, 128>}, {pipeline_mode = #tpu.pipeline_mode<synchronous>, transform_indices = @transform_6, window_bounds = array<i64: 1, 128>}, {pipeline_mode = #tpu.pipeline_mode<synchronous>, transform_indices = @transform_7, window_bounds = array<i64: 1, 128>}, {pipeline_mode = #tpu.pipeline_mode<synchronous>, transform_indices = @transform_8, window_bounds = array<i64: 128, 128>}, {pipeline_mode = #tpu.pipeline_mode<synchronous>, transform_indices = @transform_9, window_bounds = array<i64: 1, 128>}, {pipeline_mode = #tpu.pipeline_mode<synchronous>, transform_indices = @transform_10, window_bounds = array<i64: 1, 128>}, {pipeline_mode = #tpu.pipeline_mode<synchronous>, transform_indices = @transform_11, window_bounds = array<i64: 128, 128>}, {pipeline_mode = #tpu.pipeline_mode<synchronous>, transform_indices = @transform_12, window_bounds = array<i64: 1, 128>}, {pipeline_mode = #tpu.pipeline_mode<synchronous>, transform_indices = @transform_13, window_bounds = array<i64: 1, 128>}, {transform_indices = @transform_14, window_bounds = array<i64: 48, 128>}]} {
    %c0 = arith.constant 0 : index
    %c0_0 = arith.constant 0 : index
    %0 = vector.load %arg1[%c0, %c0_0] : memref<48x64xbf16, #tpu.memory_space<vmem>>, vector<48x64xbf16>
    %c0_1 = arith.constant 0 : index
    %c0_2 = arith.constant 0 : index
    %1 = vector.load %arg2[%c0_1, %c0_2] : memref<48x1xf32, #tpu.memory_space<vmem>>, vector<48x1xf32>
    %c0_3 = arith.constant 0 : index
    %c0_4 = arith.constant 0 : index
    %2 = vector.load %arg3[%c0_3, %c0_4] : memref<64x128xbf16, #tpu.memory_space<vmem>>, vector<64x128xbf16>
    %cst = arith.constant dense<0.000000e+00> : vector<48x128xf32>
    %3 = tpu.matmul %0, %2, %cst {dimension_numbers = #tpu.dot_dimension_numbers<[1], [0], [0], [1], [0, 0, 1, 1], [], []>} : vector<48x64xbf16>, vector<64x128xbf16>, vector<48x128xf32> -> vector<48x128xf32>
    %c0_5 = arith.constant 0 : index
    %c0_6 = arith.constant 0 : index
    %4 = vector.load %arg4[%c0_5, %c0_6] : memref<1x128xf32, #tpu.memory_space<vmem>>, vector<1x128xf32>
    %5 = vector.broadcast %1 : vector<48x1xf32> to vector<48x128xf32>
    %6 = vector.broadcast %4 : vector<1x128xf32> to vector<48x128xf32>
    %7 = arith.mulf %5, %6 : vector<48x128xf32>
    %8 = arith.addf %3, %7 : vector<48x128xf32>
    %c0_7 = arith.constant 0 : index
    %c0_8 = arith.constant 0 : index
    %9 = vector.load %arg5[%c0_7, %c0_8] : memref<1x128xf32, #tpu.memory_space<vmem>>, vector<1x128xf32>
    %10 = vector.broadcast %9 : vector<1x128xf32> to vector<48x128xf32>
    %11 = arith.addf %8, %10 : vector<48x128xf32>
    %cst_9 = arith.constant 1.702000e+00 : f32
    %12 = vector.broadcast %cst_9 : f32 to vector<48x128xf32>
    %13 = arith.mulf %12, %11 : vector<48x128xf32>
    %14 = arith.negf %13 : vector<48x128xf32>
    %15 = math.exp %14 : vector<48x128xf32>
    %cst_10 = arith.constant 1.000000e+00 : f32
    %16 = vector.broadcast %cst_10 : f32 to vector<48x128xf32>
    %17 = arith.addf %16, %15 : vector<48x128xf32>
    %18 = arith.divf %16, %17 : vector<48x128xf32>
    %19 = arith.mulf %11, %18 : vector<48x128xf32>
    %c0_11 = arith.constant 0 : index
    %c0_12 = arith.constant 0 : index
    %20 = vector.load %arg6[%c0_11, %c0_12] : memref<128x128xbf16, #tpu.memory_space<vmem>>, vector<128x128xbf16>
    %21 = arith.truncf %19 : vector<48x128xf32> to vector<48x128xbf16>
    %cst_13 = arith.constant dense<0.000000e+00> : vector<48x128xf32>
    %22 = tpu.matmul %21, %20, %cst_13 {dimension_numbers = #tpu.dot_dimension_numbers<[1], [0], [0], [1], [0, 0, 1, 1], [], []>} : vector<48x128xbf16>, vector<128x128xbf16>, vector<48x128xf32> -> vector<48x128xf32>
    %c0_14 = arith.constant 0 : index
    %c0_15 = arith.constant 0 : index
    %23 = vector.load %arg7[%c0_14, %c0_15] : memref<1x128xf32, #tpu.memory_space<vmem>>, vector<1x128xf32>
    %24 = vector.broadcast %1 : vector<48x1xf32> to vector<48x128xf32>
    %25 = vector.broadcast %23 : vector<1x128xf32> to vector<48x128xf32>
    %26 = arith.mulf %24, %25 : vector<48x128xf32>
    %27 = arith.addf %22, %26 : vector<48x128xf32>
    %c0_16 = arith.constant 0 : index
    %c0_17 = arith.constant 0 : index
    %28 = vector.load %arg8[%c0_16, %c0_17] : memref<1x128xf32, #tpu.memory_space<vmem>>, vector<1x128xf32>
    %29 = vector.broadcast %28 : vector<1x128xf32> to vector<48x128xf32>
    %30 = arith.addf %27, %29 : vector<48x128xf32>
    %cst_18 = arith.constant 1.702000e+00 : f32
    %31 = vector.broadcast %cst_18 : f32 to vector<48x128xf32>
    %32 = arith.mulf %31, %30 : vector<48x128xf32>
    %33 = arith.negf %32 : vector<48x128xf32>
    %34 = math.exp %33 : vector<48x128xf32>
    %cst_19 = arith.constant 1.000000e+00 : f32
    %35 = vector.broadcast %cst_19 : f32 to vector<48x128xf32>
    %36 = arith.addf %35, %34 : vector<48x128xf32>
    %37 = arith.divf %35, %36 : vector<48x128xf32>
    %38 = arith.mulf %30, %37 : vector<48x128xf32>
    %c0_20 = arith.constant 0 : index
    %c0_21 = arith.constant 0 : index
    %39 = vector.load %arg9[%c0_20, %c0_21] : memref<128x128xbf16, #tpu.memory_space<vmem>>, vector<128x128xbf16>
    %40 = arith.truncf %38 : vector<48x128xf32> to vector<48x128xbf16>
    %cst_22 = arith.constant dense<0.000000e+00> : vector<48x128xf32>
    %41 = tpu.matmul %40, %39, %cst_22 {dimension_numbers = #tpu.dot_dimension_numbers<[1], [0], [0], [1], [0, 0, 1, 1], [], []>} : vector<48x128xbf16>, vector<128x128xbf16>, vector<48x128xf32> -> vector<48x128xf32>
    %c0_23 = arith.constant 0 : index
    %c0_24 = arith.constant 0 : index
    %42 = vector.load %arg10[%c0_23, %c0_24] : memref<1x128xf32, #tpu.memory_space<vmem>>, vector<1x128xf32>
    %43 = vector.broadcast %1 : vector<48x1xf32> to vector<48x128xf32>
    %44 = vector.broadcast %42 : vector<1x128xf32> to vector<48x128xf32>
    %45 = arith.mulf %43, %44 : vector<48x128xf32>
    %46 = arith.addf %41, %45 : vector<48x128xf32>
    %c0_25 = arith.constant 0 : index
    %c0_26 = arith.constant 0 : index
    %47 = vector.load %arg11[%c0_25, %c0_26] : memref<1x128xf32, #tpu.memory_space<vmem>>, vector<1x128xf32>
    %48 = vector.broadcast %47 : vector<1x128xf32> to vector<48x128xf32>
    %49 = arith.addf %46, %48 : vector<48x128xf32>
    %cst_27 = arith.constant 1.702000e+00 : f32
    %50 = vector.broadcast %cst_27 : f32 to vector<48x128xf32>
    %51 = arith.mulf %50, %49 : vector<48x128xf32>
    %52 = arith.negf %51 : vector<48x128xf32>
    %53 = math.exp %52 : vector<48x128xf32>
    %cst_28 = arith.constant 1.000000e+00 : f32
    %54 = vector.broadcast %cst_28 : f32 to vector<48x128xf32>
    %55 = arith.addf %54, %53 : vector<48x128xf32>
    %56 = arith.divf %54, %55 : vector<48x128xf32>
    %57 = arith.mulf %49, %56 : vector<48x128xf32>
    %c0_29 = arith.constant 0 : index
    %c0_30 = arith.constant 0 : index
    %58 = vector.load %arg12[%c0_29, %c0_30] : memref<128x128xbf16, #tpu.memory_space<vmem>>, vector<128x128xbf16>
    %59 = arith.truncf %57 : vector<48x128xf32> to vector<48x128xbf16>
    %cst_31 = arith.constant dense<0.000000e+00> : vector<48x128xf32>
    %60 = tpu.matmul %59, %58, %cst_31 {dimension_numbers = #tpu.dot_dimension_numbers<[1], [0], [0], [1], [0, 0, 1, 1], [], []>} : vector<48x128xbf16>, vector<128x128xbf16>, vector<48x128xf32> -> vector<48x128xf32>
    %c0_32 = arith.constant 0 : index
    %c0_33 = arith.constant 0 : index
    %61 = vector.load %arg13[%c0_32, %c0_33] : memref<1x128xf32, #tpu.memory_space<vmem>>, vector<1x128xf32>
    %62 = vector.broadcast %1 : vector<48x1xf32> to vector<48x128xf32>
    %63 = vector.broadcast %61 : vector<1x128xf32> to vector<48x128xf32>
    %64 = arith.mulf %62, %63 : vector<48x128xf32>
    %65 = arith.addf %60, %64 : vector<48x128xf32>
    %c0_34 = arith.constant 0 : index
    %c0_35 = arith.constant 0 : index
    %66 = vector.load %arg14[%c0_34, %c0_35] : memref<1x128xf32, #tpu.memory_space<vmem>>, vector<1x128xf32>
    %67 = vector.broadcast %66 : vector<1x128xf32> to vector<48x128xf32>
    %68 = arith.addf %65, %67 : vector<48x128xf32>
    %c0_36 = arith.constant 0 : index
    %c0_37 = arith.constant 0 : index
    %69 = vector.load %arg15[%c0_36, %c0_37] : memref<48x128xf32, #tpu.memory_space<vmem>>, vector<48x128xf32>
    tpu.vector_store %arg15[%c0_36, %c0_37], %68 {strides = array<i32>} : memref<48x128xf32, #tpu.memory_space<vmem>>, vector<48x128xf32>,
    return
  }
  func.func @transform_0(%arg0: i32) -> (i32, i32) {
    %c0_i32 = arith.constant 0 : i32
    %c0_i32_0 = arith.constant 0 : i32
    return %arg0, %c0_i32 : i32, i32
  }
  func.func @transform_1(%arg0: i32) -> (i32, i32) {
    %c0_i32 = arith.constant 0 : i32
    %c0_i32_0 = arith.constant 0 : i32
    return %arg0, %c0_i32 : i32, i32
  }
  func.func @transform_2(%arg0: i32) -> (i32, i32) {
    %c0_i32 = arith.constant 0 : i32
    %c0_i32_0 = arith.constant 0 : i32
    %c0_i32_1 = arith.constant 0 : i32
    return %c0_i32, %c0_i32_0 : i32, i32
  }
  func.func @transform_3(%arg0: i32) -> (i32, i32) {
    %c0_i32 = arith.constant 0 : i32
    %c0_i32_0 = arith.constant 0 : i32
    %c0_i32_1 = arith.constant 0 : i32
    return %c0_i32, %c0_i32_0 : i32, i32
  }
  func.func @transform_4(%arg0: i32) -> (i32, i32) {
    %c0_i32 = arith.constant 0 : i32
    %c0_i32_0 = arith.constant 0 : i32
    %c0_i32_1 = arith.constant 0 : i32
    return %c0_i32, %c0_i32_0 : i32, i32
  }
  func.func @transform_5(%arg0: i32) -> (i32, i32) {
    %c0_i32 = arith.constant 0 : i32
    %c0_i32_0 = arith.constant 0 : i32
    %c0_i32_1 = arith.constant 0 : i32
    return %c0_i32, %c0_i32_0 : i32, i32
  }
  func.func @transform_6(%arg0: i32) -> (i32, i32) {
    %c0_i32 = arith.constant 0 : i32
    %c0_i32_0 = arith.constant 0 : i32
    %c0_i32_1 = arith.constant 0 : i32
    return %c0_i32, %c0_i32_0 : i32, i32
  }
  func.func @transform_7(%arg0: i32) -> (i32, i32) {
    %c0_i32 = arith.constant 0 : i32
    %c0_i32_0 = arith.constant 0 : i32
    %c0_i32_1 = arith.constant 0 : i32
    return %c0_i32, %c0_i32_0 : i32, i32
  }
  func.func @transform_8(%arg0: i32) -> (i32, i32) {
    %c0_i32 = arith.constant 0 : i32
    %c0_i32_0 = arith.constant 0 : i32
    %c0_i32_1 = arith.constant 0 : i32
    return %c0_i32, %c0_i32_0 : i32, i32
  }
  func.func @transform_9(%arg0: i32) -> (i32, i32) {
    %c0_i32 = arith.constant 0 : i32
    %c0_i32_0 = arith.constant 0 : i32
    %c0_i32_1 = arith.constant 0 : i32
    return %c0_i32, %c0_i32_0 : i32, i32
  }
  func.func @transform_10(%arg0: i32) -> (i32, i32) {
    %c0_i32 = arith.constant 0 : i32
    %c0_i32_0 = arith.constant 0 : i32
    %c0_i32_1 = arith.constant 0 : i32
    return %c0_i32, %c0_i32_0 : i32, i32
  }
  func.func @transform_11(%arg0: i32) -> (i32, i32) {
    %c0_i32 = arith.constant 0 : i32
    %c0_i32_0 = arith.constant 0 : i32
    %c0_i32_1 = arith.constant 0 : i32
    return %c0_i32, %c0_i32_0 : i32, i32
  }
  func.func @transform_12(%arg0: i32) -> (i32, i32) {
    %c0_i32 = arith.constant 0 : i32
    %c0_i32_0 = arith.constant 0 : i32
    %c0_i32_1 = arith.constant 0 : i32
    return %c0_i32, %c0_i32_0 : i32, i32
  }
  func.func @transform_13(%arg0: i32) -> (i32, i32) {
    %c0_i32 = arith.constant 0 : i32
    %c0_i32_0 = arith.constant 0 : i32
    %c0_i32_1 = arith.constant 0 : i32
    return %c0_i32, %c0_i32_0 : i32, i32
  }
  func.func @transform_14(%arg0: i32) -> (i32, i32) {
    %c0_i32 = arith.constant 0 : i32
    %c0_i32_0 = arith.constant 0 : i32
    return %arg0, %c0_i32 : i32, i32
  }
}

</mosaic_0001>

<bundles_post_ra>
// kernel: tpu_custom_call.1
= control target key start
LH: loop header
LB: loop body
LE: loop exit
PB: predicated region body
PF: predicated region fallthrough
CT: control target
= control target key end

     0   :  { %s2366_s0 = inlined_call_operand.vmem [shape: bf16[96,64], index: 0, kind: input, shape index: {}]   ;;  %s2367_s1 = inlined_call_operand.vmem [shape: f32[96,1], index: 1, kind: input, shape index: {}]   ;;  %s2368_s2 = inlined_call_operand.vmem [shape: bf16[64,128], index: 2, kind: input, shape index: {}]   ;;  %s2369_s3 = inlined_call_operand.vmem [shape: f32[1,128], index: 3, kind: input, shape index: {}]   ;;  %s2370_s4 = inlined_call_operand.vmem [shape: f32[1,128], index: 4, kind: input, shape index: {}]   ;;  %s2371_s5 = inlined_call_operand.vmem [shape: bf16[128,128], index: 5, kind: input, shape index: {}]   ;;  %s2372_s6 = inlined_call_operand.vmem [shape: f32[1,128], index: 6, kind: input, shape index: {}]   ;;  %s2373_s7 = inlined_call_operand.vmem [shape: f32[1,128], index: 7, kind: input, shape index: {}]   ;;  %s2374_s8 = inlined_call_operand.vmem [shape: bf16[128,128], index: 8, kind: input, shape index: {}]   ;;  %s2375_s9 = inlined_call_operand.vmem [shape: f32[1,128], index: 9, kind: input, shape index: {}]   ;;  %s2376_s10 = inlined_call_operand.vmem [shape: f32[1,128], index: 10, kind: input, shape index: {}]   ;;  %s2377_s11 = inlined_call_operand.hbm [shape: bf16[128,128], index: 11, kind: input, shape index: {}]   ;;  %s2378_s12 = inlined_call_operand.vmem [shape: f32[1,128], index: 12, kind: input, shape index: {}]   ;;  %s2379_s13 = inlined_call_operand.vmem [shape: f32[1,128], index: 13, kind: input, shape index: {}]   ;;  %s2380_s14 = inlined_call_operand.hbm [shape: f32[96,128], index: 14, kind: output, shape index: {}]  }
   0x1   :  { %2384 = sst [smem:[#allocation11_spill]] %s2377_s11 }
   0x2   :  { %19 = vsyncpa [#allocation3], 0 }
   0x3   :  { %20 = vsyncpa [#allocation4], 0 }
   0x4   :  { %22 = vsyncpa [#allocation4 + $0x1], 0  ;;  %s1977_s29 = smov 0   ;;  %s1979_s30 = smov 0  }
   0x5   :  { %s1981_s15 = smov 0   ;;  %s1983_s16 = smov 0  }
   0x6 LB: > { %2385 = sst [smem:[#allocation8_spill]] %s1890_s15  ;;  %s1998_s17 = sadd.s32 4294967295, %s1894_s16   ;;  %s1894_s16 = sphi %s1983_s16, %s2397_s16   ;;  %s1890_s15 = sphi %s1981_s15, %s2399_s15   ;;  %s1886_s30 = sphi %s1979_s30, %s2401_s30   ;;  %s1882_s29 = sphi %s1977_s29, %s2400_s29  }
   0x7   : > { %s1471_s18 = sadd.s32 4294967294, %s1894_s16   ;;  %s2002_s19 = sadd.s32 1, %s1894_s16  }
   0x8   : > { %2386 = sst [smem:[#allocation9_spill]] %s2002_s19  ;;  %s339_s20 = sadd.s32 1, %s1890_s15 }
   0x9   : > { %s336_s21 = ssub.s32 %s1894_s16, %s2002_s19  ;;  %p349_p0 = scmp.ne.s32.totalorder %s1890_s15, %s1886_s30 }
   0xa   : > { %p337_p1 = scmp.eq.s32.totalorder %s336_s21, 0  ;;  %p350_p2 = scmp.eq.s32.totalorder %s1998_s17, 1 }
   0xb   : > { %p355_p3 = scmp.ne.s32.totalorder %s1886_s30, %s1882_s29  ;;  %p356_p4 = scmp.eq.s32.totalorder %s1471_s18, 1 }
   0xc   : > { %s2013_s22 = scalar_select %p337_p1, %s1890_s15, %s339_s20  }
   0xd   : > { %p2015_p5 = por %p350_p2, %p349_p0  ;;  %p2019_p6 = por %p356_p4, %p355_p3 }
   0xe   : > { %2387 = sst [smem:[#allocation10_spill]] %s2013_s22  ;;  %p1472_p7 = scmp.ge.s32.totalorder %s1894_s16, 1 }
   0xf   : > { %p363_p8 = scmp.lt.s32.totalorder %s1894_s16, 3  ;;  %p1674_p9 = scmp.eq.s32.totalorder %s1998_s17, 0 }
  0x10   : > { %s2390_s11 = sld [smem:[#allocation11_spill]]  ;;  %s1896_s28 = smov [#allocation2]  }
  0x11   : > { %p364_p10 = pnand %p1472_p7, %p363_p8  ;;  %s403_s18 = sshll.u32 %s1896_s28, 4  ;;  %s404_s18 = int_to_ptr.vmem [resolvable:$true] %s403_s18 }
  0x12   : > { %s1897_s20 = smov 64   ;;  %s1898_s21 = smov 4  }
  0x13   : > { %p1666_p11 = pneg %p364_p10  ;;  %443 = sbr.rel (%p364_p10) target bundleno = 744 (0x2e8), region = 76 }
  0x15   : > { %p1667_p12 = pnand %p1674_p9, %p1666_p11 }
  0x16   : > { %s401_s27 = sshll.u32 %s2390_s11, 4  ;;  %s402_s27 = int_to_ptr.hbm [resolvable:$true] %s401_s27 }
  0x17   : > { %1669 = dma.hbm_to_vmem [thread:$0]  (!%p1667_p12), %s402_s27, 1024, %s404_s18, [#allocation3], %s1897_s20, %s1897_s20, %s1898_s21  }
  0x18   : > { %1873 = dma.done.wait (%p1674_p9), [#allocation3], 1024  }
  0x19   : > { %1875 = vsyncadd (%p1674_p9), [#allocation3], 4294966272  ;;  %s495_s25 = smul.u32 6, %s1998_s17  ;;  %v1899_v0 = vmov 0   ;;  %v1633_v1 = vld [vmem:[%s2368_s2 + $0x18] sm:$0xff]  ;;  %v1632_v3 = vld [vmem:[%s2368_s2 + $0x10] sm:$0xff] }
  0x1a   : > { %1715 = vset.pattern.permute.xlu0 %v1899_v0  ;;  %1716 = vset.pattern.permute.xlu1 %v1899_v0  ;;  %v1631_v5 = vld [vmem:[%s2368_s2 + $0x8] sm:$0xff]  ;;  %v1630_v8 = vld [vmem:[%s2368_s2] sm:$0xff]  ;;  %vm608_vm0 = vcmask 523264   ;;  %v1641_v14 = vld [vmem:[%s2371_s5 + $0x38] sm:$0xff]  ;;  %s492_s15 = sand.u32 1, %s1886_s30   ;;  %s1848_s27 = scalar_lea.hbm %s2380_s14, 96 }
  0x1b   : > { %p496_p13 = scmp.lt.s32.totalorder %s495_s25, 11  ;;  %1717 = vset.pattern.permute.xlu2 %v1899_v0  ;;  %622 = vmatpush.bf16.msra.mxu0 %v1633_v1  ;;  %v1640_v15 = vld [vmem:[%s2371_s5 + $0x30] sm:$0xff]  ;;  %v1639_v16 = vld [vmem:[%s2371_s5 + $0x28] sm:$0xff]  ;;  %v2066_v17 = vld [vmem:[%s2369_s3] ss:$0 sm:$0xff]  ;;  %s1659_s21 = smul.u32 48, %s492_s15 }
  0x1c   : > { %855 = vmatpush.bf16.msra.mxu1 %v1641_v14  ;;  %v1638_v19 = vld [vmem:[%s2371_s5 + $0x20] sm:$0xff]  ;;  %v1637_v21 = vld [vmem:[%s2371_s5 + $0x18] sm:$0xff]  ;;  %v1636_v25 = vld [vmem:[%s2371_s5 + $0x10] sm:$0xff] }
  0x1d   : > { %s2403_s25 = smov (!%p496_p13, %s495_s25), 11  ;;  %v2081_v22 = vld [vmem:[%s2370_s4] ss:$0 sm:$0xff]  ;;  %v1635_v29 = vld [vmem:[%s2371_s5 + $0x8] sm:$0xff] }
  0x1e   : > { %s1478_s26 = sshll.u32 %s2403_s25, 3  ;;  %s1477_s11 = sshll.u32 %s2403_s25, 2  ;;  %v1634_v35 = vld [vmem:[%s2371_s5] sm:$0xff] }
  0x1f   : > { %s505_s20 = scalar_lea.vmem %s2367_s1, %s1478_s26  ;;  %623 = vmatpush.bf16.msra.mxu0 %v1632_v3  ;;  %s499_s22 = scalar_lea.vmem %s2366_s0, %s1477_s11 }
  0x20   : > { %v515_v2 = vld [vmem:[%s505_s20] sm:$0xff]  ;;  %v517_v4 = vld [vmem:[%s505_s20 + $0x10] sm:$0xff]  ;;  %v516_v6 = vld [vmem:[%s505_s20 + $0x8] sm:$0xff]  ;;  %856 = vmatpush.bf16.msra.mxu1 %v1640_v15  ;;  %s1658_s26 = smul.u32 48, %s1998_s17 }
  0x21   : > { %532 = vperm.xlu0 %1715, %v515_v2   ;;  %542 = vperm.xlu1 %1716, %v517_v4   ;;  %v518_v7 = vld [vmem:[%s505_s20 + $0x18] sm:$0xff]  ;;  %v1627_v9 = vld [vmem:[%s499_s22] sm:$0xff]  ;;  %v520_v11 = vld [vmem:[%s505_s20 + $0x28] sm:$0xff] }
  0x22   : > { %v519_v10 = vld [vmem:[%s505_s20 + $0x20] sm:$0xff]  ;;  %v1628_v12 = vld [vmem:[%s499_s22 + $0x8] sm:$0xff]  ;;  %v1629_v13 = vld [vmem:[%s499_s22 + $0x10] sm:$0xff]  ;;  %s2319_s20 = scalar_lea.vmem [#allocation5], %s1659_s21  ;;  %s1381_s22 = scalar_lea.hbm %s2380_s14, %s1658_s26 }
  0x23   : > { %624 = vmatpush.bf16.msra.mxu0 %v1631_v5  ;;  %552 = vperm.xlu2 %1717, %v519_v10   ;;  %s1382_s19 = sshll.u32 %s2319_s20, 4  ;;  %s1384_s25 = sshll.u32 %s1381_s22, 4  ;;  %s1383_s19 = int_to_ptr.vmem [resolvable:$true] %s1382_s19  ;;  %s1385_s25 = int_to_ptr.hbm [resolvable:$true] %s1384_s25 }
  0x24   : > { %857 = vmatpush.bf16.msra.mxu1 %v1639_v16  ;;  %s1370_s21 = scalar_lea.sflag [#allocation4], %s492_s15  ;;  %s1842_s17 = sshra.s32 %s1385_s25, 4  ;;  %s1843_s17 = int_to_ptr.hbm [resolvable:$true] %s1842_s17 }
  0x25   : > { %s1844_s11 = scalar_lea.hbm %s1843_s17, 48  ;;  %p1849_p3 = scmp.lt.s32.totalorder %s1843_s17, %s2380_s14 }
  0x26   : > { %p1845_p0 = scmp.ne.s32.totalorder %s1843_s17, %s1844_s11  ;;  %p1850_p4 = scmp.lt.s32.totalorder %s1848_s27, %s1844_s11 }
  0x27   : > { %625 = vmatpush.bf16.msra.mxu0 %v1630_v8 }
  0x28   : > { %858 = vmatpush.bf16.msra.mxu1 %v1638_v19  ;;  %p1846_p1 = pnand %p1845_p0, %p2015_p5  ;;  %p1851_p7 = por %p1850_p4, %p1849_p3 }
  0x29   : > { %537 = vperm.xlu0 %1715, %v516_v6   ;;  %547 = vperm.xlu1 %1716, %v518_v7  }
  0x2a   : > { %1507 = vmatmul.msk.bf16.vlgmr.msra.gmra.mxu0 %vm608_vm0, %v1627_v9  ;;  %p1847_p2 = pneg %p1846_p1 }
  0x2b   : > { %557 = vperm.xlu2 %1717, %v520_v11  }
  0x2c   : > { %859 = vmatpush.bf16.msra.mxu1 %v1637_v21  ;;  %p1852_p8 = pnand %p1851_p7, %p1847_p2 }
  0x30   : > { %860 = vmatpush.bf16.msra.mxu1 %v1636_v25 }
  0x34   : > { %861 = vmatpush.bf16.msra.mxu1 %v1635_v29 }
  0x38   : > { %862 = vmatpush.bf16.msra.mxu1 %v1634_v35 }
  0x3a   : > { %1508 = vmatmul.msk.bf16.gmra.mxu0 %vm608_vm0, %v1628_v12 }
  0x4a   : > { %1509 = vmatmul.msk.bf16.gmra.mxu0 %vm608_vm0, %v1629_v13 }
  0x7d   : > { %v2116_v53 = vpop.permute.xlu2 %552 }
  0x7e   : > { %v567_v59 = vmul.f32 %v2066_v17, %v2116_v53 }
  0x85   : > { %v2127_v6 = vpop.permute.xlu2 %557 }
  0x86   : > { %v568_v16 = vmul.f32 %v2066_v17, %v2127_v6 }
  0x93   : > { %v2068_v18 = vpop.permute.xlu0 %532  ;;  %v2097_v34 = vpop.permute.xlu1 %542 }
  0x94   : > { %v563_v20 = vmul.f32 %v2066_v17, %v2068_v18  ;;  %v565_v38 = vmul.f32 %v2066_v17, %v2097_v34 }
  0x9b   : > { %v2089_v27 = vpop.permute.xlu0 %537  ;;  %v2111_v45 = vpop.permute.xlu1 %547 }
  0x9c   : > { %v564_v31 = vmul.f32 %v2066_v17, %v2089_v27  ;;  %v566_v49 = vmul.f32 %v2066_v17, %v2111_v45 }
  0xa7   : > { %v627_v23 = vpop.f32.mrf.mxu0 }
  0xa8   : > { %v628_v24 = vadd.f32 %v627_v23, %v563_v20 }
  0xaa   : > { %v2087_v26 = vadd.f32 %v2081_v22, %v628_v24 }
  0xac   : > { %v1510_v28 = vmul.f32 -1.702, %v2087_v26 }
  0xae   : > { %v664_v30 = vmul.f32 1.442695, %v1510_v28 }
  0xaf   : > { %v629_v32 = vpop.f32.mrf.mxu0 }
  0xb0   : > { %1726 = vpow2.f32 %v664_v30  ;;  %v630_v33 = vadd.f32 %v629_v32, %v564_v31 }
  0xb2   : > { %v2103_v36 = vadd.f32 %v2081_v22, %v630_v33 }
  0xb4   : > { %v1511_v37 = vmul.f32 -1.702, %v2103_v36 }
  0xb6   : > { %v1727_v39 = vpop.eup %1726  ;;  %v666_v40 = vmul.f32 1.442695, %v1511_v37 }
  0xb7   : > { %v676_v41 = vadd.f32 1.0, %v1727_v39  ;;  %v632_v42 = vpop.f32.mrf.mxu0 }
  0xb8   : > { %1728 = vpow2.f32 %v666_v40  ;;  %v633_v43 = vadd.f32 %v632_v42, %v565_v38 }
  0xb9   : > { %1730 = vrcp.f32 %v676_v41  ;;  %v693_v5 = vand.u32 2147483648, %v676_v41  ;;  %vm687_vm2 = vweird.f32 %v676_v41  ;;  %v691_v8 = vand.u32 2147483647, %v676_v41 }
  0xba   : > { %v2109_v44 = vadd.f32 %v2081_v22, %v633_v43 }
  0xbb   : > { %v694_v19 = vor.u32 1.1754944e-38, %v693_v5  ;;  %vm692_vm5 = vcmp.eq.f32.partialorder %v691_v8, 8.507059e+37 }
  0xbc   : > { %v1512_v46 = vmul.f32 -1.702, %v2109_v44 }
  0xbe   : > { %v1729_v47 = vpop.eup %1728  ;;  %v668_v48 = vmul.f32 1.442695, %v1512_v46 }
  0xbf   : > { %v1731_v50 = vpop.eup %1730  ;;  %v677_v51 = vadd.f32 1.0, %v1729_v47  ;;  %v634_v52 = vpop.f32.mrf.mxu0 }
  0xc0   : > { %1732 = vpow2.f32 %v668_v48  ;;  %v635_v54 = vadd.f32 %v634_v52, %v566_v49  ;;  %v683_v55 = vmul.f32 %v1731_v50, %v676_v41  ;;  %vm688_vm1 = vweird.f32 %v1731_v50 }
  0xc1   : > { %1734 = vrcp.f32 %v677_v51  ;;  %vm2132_vm3 = vmor %vm687_vm2, %vm688_vm1  ;;  %v706_v11 = vand.u32 2147483647, %v677_v51  ;;  %v708_v12 = vand.u32 2147483648, %v677_v51  ;;  %vm702_vm6 = vweird.f32 %v677_v51 }
  0xc2   : > { %v2119_v56 = vadd.f32 %v2081_v22, %v635_v54  ;;  %v684_v57 = vsub.f32 1.0, %v683_v55 }
  0xc3   : > { %vm707_vm8 = vcmp.eq.f32.partialorder %v706_v11, 8.507059e+37  ;;  %v709_v30 = vor.u32 1.1754944e-38, %v708_v12 }
  0xc4   : > { %v1513_v58 = vmul.f32 -1.702, %v2119_v56  ;;  %v685_v60 = vmul.f32 %v1731_v50, %v684_v57 }
  0xc6   : > { %v1733_v61 = vpop.eup %1732  ;;  %v670_v62 = vmul.f32 1.442695, %v1513_v58  ;;  %v686_v3 = vadd.f32 %v1731_v50, %v685_v60 }
  0xc7   : > { %v1735_v63 = vpop.eup %1734  ;;  %v2124_v0 = vadd.f32 1.0, %v1733_v61  ;;  %v637_v1 = vpop.f32.mrf.mxu0 }
  0xc8   : > { %1736 = vpow2.f32 %v670_v62  ;;  %v638_v2 = vadd.f32 %v637_v1, %v567_v59  ;;  %v698_v4 = vmul.f32 %v1735_v63, %v677_v51  ;;  %v690_v14 = vsel %vm2132_vm3, %v1731_v50, %v686_v3 }
  0xc9   : > { %1738 = vrcp.f32 %v2124_v0  ;;  %vm703_vm4 = vweird.f32 %v1735_v63  ;;  %v695_v29 = vsel %vm692_vm5, %v694_v19, %v690_v14  ;;  %vm717_vm10 = vweird.f32 %v2124_v0 }
  0xca   : > { %v2130_v7 = vadd.f32 %v2081_v22, %v638_v2  ;;  %v699_v9 = vsub.f32 1.0, %v698_v4  ;;  %vm704_vm7 = vmor %vm702_vm6, %vm703_vm4  ;;  %v772_v37 = vmul.f32 %v695_v29, %v2087_v26  ;;  %v721_v26 = vand.u32 2147483647, %v2124_v0 }
  0xcc   : > { %v1514_v13 = vmul.f32 -1.702, %v2130_v7  ;;  %v700_v15 = vmul.f32 %v1735_v63, %v699_v9  ;;  %vm722_vm13 = vcmp.eq.f32.partialorder %v721_v26, 8.507059e+37 }
  0xce   : > { %v1737_v20 = vpop.eup %1736  ;;  %v672_v21 = vmul.f32 1.442695, %v1514_v13  ;;  %v701_v23 = vadd.f32 %v1735_v63, %v700_v15 }
  0xcf   : > { %v1739_v24 = vpop.eup %1738  ;;  %v679_v25 = vadd.f32 1.0, %v1737_v20  ;;  %v639_v28 = vpop.f32.mrf.mxu0 }
  0xd0   : > { %1740 = vpow2.f32 %v672_v21  ;;  %v640_v31 = vadd.f32 %v639_v28, %v568_v16  ;;  %v705_v32 = vsel %vm704_vm7, %v1735_v63, %v701_v23  ;;  %v713_v33 = vmul.f32 %v1739_v24, %v2124_v0 }
  0xd1   : > { %1742 = vrcp.f32 %v679_v25  ;;  %v710_v17 = vsel %vm707_vm8, %v709_v30, %v705_v32  ;;  %vm718_vm9 = vweird.f32 %v1739_v24  ;;  %v738_v51 = vand.u32 2147483648, %v679_v25  ;;  %v1649_v32 = vld [vmem:[%s2374_s8 + $0x38] sm:$0xff] }
  0xd2   : > { %v2143_v35 = vadd.f32 %v2081_v22, %v640_v31  ;;  %v773_v38 = vmul.f32 %v710_v17, %v2103_v36  ;;  %v714_v39 = vsub.f32 1.0, %v713_v33  ;;  %v723_v22 = vand.u32 2147483648, %v2124_v0  ;;  %vm719_vm11 = vmor %vm717_vm10, %vm718_vm9  ;;  %1092 = vmatpush.bf16.msra.mxu2 %v1649_v32  ;;  %v1648_v33 = vld [vmem:[%s2374_s8 + $0x30] sm:$0xff]  ;;  %v1647_v17 = vld [vmem:[%s2374_s8 + $0x28] sm:$0xff] }
  0xd3   : > { %v736_v55 = vand.u32 2147483647, %v679_v25  ;;  %vm732_vm14 = vweird.f32 %v679_v25  ;;  %v739_v63 = vor.u32 1.1754944e-38, %v738_v51 }
  0xd4   : > { %v1515_v40 = vmul.f32 -1.702, %v2143_v35  ;;  %v794_v41 = vpack.c.bf16 %v773_v38, %v772_v37  ;;  %v715_v42 = vmul.f32 %v1739_v24, %v714_v39  ;;  %v724_v57 = vor.u32 1.1754944e-38, %v723_v22  ;;  %v2177_v38 = vld [vmem:[%s2373_s7] ss:$0 sm:$0xff] }
  0xd5   : > { %vm737_vm0 = vcmp.eq.f32.partialorder %v736_v55, 8.507059e+37 }
  0xd6   : > { %v1741_v43 = vpop.eup %1740  ;;  %v674_v46 = vmul.f32 1.442695, %v1515_v40  ;;  %863 = vmatmul.bf16.vlgmr.msra.gmra.mxu1 %v794_v41  ;;  %v716_v49 = vadd.f32 %v1739_v24, %v715_v42  ;;  %1093 = vmatpush.bf16.msra.mxu2 %v1648_v33  ;;  %v1645_v40 = vld [vmem:[%s2374_s8 + $0x18] sm:$0xff] }
  0xd7   : > { %v1743_v47 = vpop.eup %1742  ;;  %v680_v48 = vadd.f32 1.0, %v1741_v43  ;;  %v1644_v43 = vld [vmem:[%s2374_s8 + $0x10] sm:$0xff] }
  0xd8   : > { %1744 = vpow2.f32 %v674_v46  ;;  %v728_v50 = vmul.f32 %v1743_v47, %v679_v25  ;;  %v720_v52 = vsel %vm719_vm11, %v1739_v24, %v716_v49  ;;  %vm733_vm12 = vweird.f32 %v1743_v47 }
  0xd9   : > { %1746 = vrcp.f32 %v680_v48  ;;  %v725_v62 = vsel %vm722_vm13, %v724_v57, %v720_v52  ;;  %vm734_vm15 = vmor %vm732_vm14, %vm733_vm12  ;;  %v753_v13 = vand.u32 2147483648, %v680_v48  ;;  %vm747_vm2 = vweird.f32 %v680_v48 }
  0xda   : > { %v729_v36 = vsub.f32 1.0, %v728_v50  ;;  %v774_v3 = vmul.f32 %v725_v62, %v2109_v44  ;;  %v751_v14 = vand.u32 2147483647, %v680_v48  ;;  %1094 = vmatpush.bf16.msra.mxu2 %v1647_v17  ;;  %v1643_v50 = vld [vmem:[%s2374_s8 + $0x8] sm:$0xff] }
  0xdb   : > { %v754_v21 = vor.u32 1.1754944e-38, %v753_v13 }
  0xdc   : > { %v730_v54 = vmul.f32 %v1743_v47, %v729_v36  ;;  %vm752_vm5 = vcmp.eq.f32.partialorder %v751_v14, 8.507059e+37  ;;  %v1642_v36 = vld [vmem:[%s2374_s8] sm:$0xff] }
  0xde   : > { %v1745_v58 = vpop.eup %1744  ;;  %v731_v59 = vadd.f32 %v1743_v47, %v730_v54 }
  0xdf   : > { %v1747_v60 = vpop.eup %1746  ;;  %v681_v61 = vadd.f32 1.0, %v1745_v58 }
  0xe0   : > { %v735_v1 = vsel %vm734_vm15, %v1743_v47, %v731_v59  ;;  %v743_v0 = vmul.f32 %v1747_v60, %v680_v48  ;;  %vm748_vm1 = vweird.f32 %v1747_v60 }
  0xe1   : > { %1748 = vrcp.f32 %v681_v61  ;;  %v740_v2 = vsel %vm737_vm0, %v739_v63, %v735_v1  ;;  %vm749_vm3 = vmor %vm747_vm2, %vm748_vm1  ;;  %v768_v16 = vand.u32 2147483648, %v681_v61  ;;  %v766_v44 = vand.u32 2147483647, %v681_v61 }
  0xe2   : > { %v775_v4 = vmul.f32 %v740_v2, %v2119_v56  ;;  %v744_v5 = vsub.f32 1.0, %v743_v0  ;;  %vm762_vm6 = vweird.f32 %v681_v61 }
  0xe3   : > { %v769_v24 = vor.u32 1.1754944e-38, %v768_v16  ;;  %vm767_vm8 = vcmp.eq.f32.partialorder %v766_v44, 8.507059e+37 }
  0xe4   : > { %v795_v8 = vpack.c.bf16 %v775_v4, %v774_v3  ;;  %v745_v9 = vmul.f32 %v1747_v60, %v744_v5 }
  0xe6   : > { %868 = vmatmul.bf16.gmra.mxu1 %v795_v8  ;;  %v746_v11 = vadd.f32 %v1747_v60, %v745_v9 }
  0xe7   : > { %v1749_v10 = vpop.eup %1748 }
  0xe8   : > { %v758_v12 = vmul.f32 %v1749_v10, %v681_v61  ;;  %v750_v19 = vsel %vm749_vm3, %v1747_v60, %v746_v11  ;;  %vm763_vm4 = vweird.f32 %v1749_v10 }
  0xe9   : > { %v755_v23 = vsel %vm752_vm5, %v754_v21, %v750_v19  ;;  %vm764_vm7 = vmor %vm762_vm6, %vm763_vm4 }
  0xea   : > { %v759_v15 = vsub.f32 1.0, %v758_v12  ;;  %v776_v29 = vmul.f32 %v755_v23, %v2130_v7  ;;  %v2167_v7 = vld [vmem:[%s2372_s6] ss:$0 sm:$0xff] }
  0xeb   : > { %v801_v37 = vmul.f32 %v2167_v7, %v2068_v18  ;;  %v802_v48 = vmul.f32 %v2167_v7, %v2089_v27  ;;  %v803_v55 = vmul.f32 %v2167_v7, %v2097_v34  ;;  %v804_v1 = vmul.f32 %v2167_v7, %v2111_v45 }
  0xec   : > { %v760_v20 = vmul.f32 %v1749_v10, %v759_v15  ;;  %v805_v14 = vmul.f32 %v2167_v7, %v2116_v53  ;;  %v806_v17 = vmul.f32 %v2167_v7, %v2127_v6 }
  0xee   : > { %v761_v56 = vadd.f32 %v1749_v10, %v760_v20 }
  0xf0   : > { %v765_v25 = vsel %vm764_vm7, %v1749_v10, %v761_v56 }
  0xf1   : > { %v770_v28 = vsel %vm767_vm8, %v769_v24, %v765_v25 }
  0xf2   : > { %v777_v30 = vmul.f32 %v770_v28, %v2143_v35  ;;  %v1646_v35 = vld [vmem:[%s2374_s8 + $0x20] sm:$0xff] }
  0xf3   : > { %1095 = vmatpush.bf16.msra.mxu2 %v1646_v35 }
  0xf4   : > { %v796_v31 = vpack.c.bf16 %v777_v30, %v776_v29 }
  0xf6   : > { %873 = vmatmul.bf16.gmra.mxu1 %v796_v31 }
  0xf7   : > { %1096 = vmatpush.bf16.msra.mxu2 %v1645_v40 }
  0xfb   : > { %1097 = vmatpush.bf16.msra.mxu2 %v1644_v43 }
  0xff   : > { %1098 = vmatpush.bf16.msra.mxu2 %v1643_v50 }
 0x103   : > { %1099 = vmatpush.bf16.msra.mxu2 %v1642_v36 }
 0x153   : > { %v864_v39 = vpop.f32.mrf.mxu1 }
 0x154   : > { %v865_v41 = vadd.f32 %v864_v39, %v801_v37 }
 0x156   : > { %v2183_v42 = vadd.f32 %v2177_v38, %v865_v41 }
 0x158   : > { %v1548_v46 = vmul.f32 -1.702, %v2183_v42 }
 0x15a   : > { %v901_v47 = vmul.f32 1.442695, %v1548_v46 }
 0x15b   : > { %v866_v49 = vpop.f32.mrf.mxu1 }
 0x15c   : > { %1750 = vpow2.f32 %v901_v47  ;;  %v867_v22 = vadd.f32 %v866_v49, %v802_v48 }
 0x15e   : > { %v2195_v26 = vadd.f32 %v2177_v38, %v867_v22 }
 0x160   : > { %v1549_v51 = vmul.f32 -1.702, %v2195_v26 }
 0x162   : > { %v1751_v52 = vpop.eup %1750  ;;  %v903_v54 = vmul.f32 1.442695, %v1549_v51 }
 0x163   : > { %v913_v57 = vadd.f32 1.0, %v1751_v52  ;;  %v869_v58 = vpop.f32.mrf.mxu1 }
 0x164   : > { %1752 = vpow2.f32 %v903_v54  ;;  %v870_v59 = vadd.f32 %v869_v58, %v803_v55 }
 0x165   : > { %1754 = vrcp.f32 %v913_v57  ;;  %v930_v56 = vand.u32 2147483648, %v913_v57  ;;  %vm924_vm10 = vweird.f32 %v913_v57  ;;  %v928_v24 = vand.u32 2147483647, %v913_v57 }
 0x166   : > { %v2204_v60 = vadd.f32 %v2177_v38, %v870_v59 }
 0x167   : > { %v931_v35 = vor.u32 1.1754944e-38, %v930_v56  ;;  %vm929_vm13 = vcmp.eq.f32.partialorder %v928_v24, 8.507059e+37 }
 0x168   : > { %v1550_v61 = vmul.f32 -1.702, %v2204_v60 }
 0x16a   : > { %v1753_v62 = vpop.eup %1752  ;;  %v905_v63 = vmul.f32 1.442695, %v1550_v61 }
 0x16b   : > { %v1755_v0 = vpop.eup %1754  ;;  %v914_v2 = vadd.f32 1.0, %v1753_v62  ;;  %v871_v3 = vpop.f32.mrf.mxu1 }
 0x16c   : > { %1756 = vpow2.f32 %v905_v63  ;;  %v872_v4 = vadd.f32 %v871_v3, %v804_v1  ;;  %v920_v5 = vmul.f32 %v1755_v0, %v913_v57  ;;  %vm925_vm9 = vweird.f32 %v1755_v0 }
 0x16d   : > { %1758 = vrcp.f32 %v914_v2  ;;  %vm2221_vm11 = vmor %vm924_vm10, %vm925_vm9  ;;  %v943_v29 = vand.u32 2147483647, %v914_v2  ;;  %v945_v30 = vand.u32 2147483648, %v914_v2  ;;  %vm939_vm14 = vweird.f32 %v914_v2 }
 0x16e   : > { %v2210_v8 = vadd.f32 %v2177_v38, %v872_v4  ;;  %v921_v9 = vsub.f32 1.0, %v920_v5 }
 0x16f   : > { %vm944_vm0 = vcmp.eq.f32.partialorder %v943_v29, 8.507059e+37  ;;  %v946_v48 = vor.u32 1.1754944e-38, %v945_v30 }
 0x170   : > { %v1551_v10 = vmul.f32 -1.702, %v2210_v8  ;;  %v922_v11 = vmul.f32 %v1755_v0, %v921_v9 }
 0x172   : > { %v1757_v12 = vpop.eup %1756  ;;  %v907_v13 = vmul.f32 1.442695, %v1551_v10  ;;  %v923_v44 = vadd.f32 %v1755_v0, %v922_v11 }
 0x173   : > { %v1759_v15 = vpop.eup %1758  ;;  %v2215_v16 = vadd.f32 1.0, %v1757_v12  ;;  %v874_v19 = vpop.f32.mrf.mxu1 }
 0x174   : > { %1760 = vpow2.f32 %v907_v13  ;;  %v875_v20 = vadd.f32 %v874_v19, %v805_v14  ;;  %v935_v21 = vmul.f32 %v1759_v15, %v914_v2  ;;  %v927_v32 = vsel %vm2221_vm11, %v1755_v0, %v923_v44 }
 0x175   : > { %1762 = vrcp.f32 %v2215_v16  ;;  %vm940_vm12 = vweird.f32 %v1759_v15  ;;  %v932_v47 = vsel %vm929_vm13, %v931_v35, %v927_v32  ;;  %vm954_vm2 = vweird.f32 %v2215_v16 }
 0x176   : > { %v2219_v23 = vadd.f32 %v2177_v38, %v875_v20  ;;  %v936_v25 = vsub.f32 1.0, %v935_v21  ;;  %vm941_vm15 = vmor %vm939_vm14, %vm940_vm12  ;;  %v1009_v51 = vmul.f32 %v932_v47, %v2183_v42  ;;  %v958_v42 = vand.u32 2147483647, %v2215_v16 }
 0x178   : > { %v1552_v31 = vmul.f32 -1.702, %v2219_v23  ;;  %v937_v33 = vmul.f32 %v1759_v15, %v936_v25  ;;  %vm959_vm5 = vcmp.eq.f32.partialorder %v958_v42, 8.507059e+37 }
 0x17a   : > { %v1761_v37 = vpop.eup %1760  ;;  %v909_v39 = vmul.f32 1.442695, %v1552_v31  ;;  %v938_v40 = vadd.f32 %v1759_v15, %v937_v33 }
 0x17b   : > { %v1763_v41 = vpop.eup %1762  ;;  %v916_v43 = vadd.f32 1.0, %v1761_v37  ;;  %v876_v46 = vpop.f32.mrf.mxu1 }
 0x17c   : > { %1764 = vpow2.f32 %v909_v39  ;;  %v877_v49 = vadd.f32 %v876_v46, %v806_v17  ;;  %v942_v50 = vsel %vm941_vm15, %v1759_v15, %v938_v40  ;;  %v950_v22 = vmul.f32 %v1763_v41, %v2215_v16 }
 0x17d   : > { %1766 = vrcp.f32 %v916_v43  ;;  %v947_v7 = vsel %vm944_vm0, %v946_v48, %v942_v50  ;;  %vm955_vm1 = vweird.f32 %v1763_v41  ;;  %v975_v2 = vand.u32 2147483648, %v916_v43  ;;  %v1657_v50 = vld [vmem:[#allocation2 + $0x38] sm:$0xff] }
 0x17e   : > { %v2232_v36 = vadd.f32 %v2177_v38, %v877_v49  ;;  %v1010_v52 = vmul.f32 %v947_v7, %v2195_v26  ;;  %v951_v54 = vsub.f32 1.0, %v950_v22  ;;  %v960_v38 = vand.u32 2147483648, %v2215_v16  ;;  %vm956_vm3 = vmor %vm954_vm2, %vm955_vm1  ;;  %1329 = vmatpush.bf16.msra.mxu3 %v1657_v50  ;;  %v1656_v22 = vld [vmem:[#allocation2 + $0x30] sm:$0xff]  ;;  %v1655_v7 = vld [vmem:[#allocation2 + $0x28] sm:$0xff] }
 0x17f   : > { %v973_v5 = vand.u32 2147483647, %v916_v43  ;;  %vm969_vm6 = vweird.f32 %v916_v43  ;;  %v976_v15 = vor.u32 1.1754944e-38, %v975_v2 }
 0x180   : > { %v1553_v55 = vmul.f32 -1.702, %v2232_v36  ;;  %v1031_v57 = vpack.c.bf16 %v1010_v52, %v1009_v51  ;;  %v952_v58 = vmul.f32 %v1763_v41, %v951_v54  ;;  %v961_v9 = vor.u32 1.1754944e-38, %v960_v38  ;;  %v2247_v51 = vld [vmem:[%s2375_s9] ss:$0 sm:$0xff] }
 0x181   : > { %vm974_vm8 = vcmp.eq.f32.partialorder %v973_v5, 8.507059e+37  ;;  %v1654_v52 = vld [vmem:[#allocation2 + $0x20] sm:$0xff]  ;;  %v1040_v5 = vmul.f32 %v2247_v51, %v2097_v34 }
 0x182   : > { %v1765_v59 = vpop.eup %1764  ;;  %v911_v61 = vmul.f32 1.442695, %v1553_v55  ;;  %1100 = vmatmul.bf16.vlgmr.msra.gmra.mxu2 %v1031_v57  ;;  %v953_v1 = vadd.f32 %v1763_v41, %v952_v58  ;;  %1330 = vmatpush.bf16.msra.mxu3 %v1656_v22  ;;  %v1653_v55 = vld [vmem:[#allocation2 + $0x18] sm:$0xff] }
 0x183   : > { %v1767_v62 = vpop.eup %1766  ;;  %v917_v63 = vadd.f32 1.0, %v1765_v59  ;;  %v1652_v59 = vld [vmem:[#allocation2 + $0x10] sm:$0xff] }
 0x184   : > { %1768 = vpow2.f32 %v911_v61  ;;  %v965_v0 = vmul.f32 %v1767_v62, %v916_v43  ;;  %v957_v3 = vsel %vm956_vm3, %v1763_v41, %v953_v1  ;;  %vm970_vm4 = vweird.f32 %v1767_v62 }
 0x185   : > { %1770 = vrcp.f32 %v917_v63  ;;  %v962_v14 = vsel %vm959_vm5, %v961_v9, %v957_v3  ;;  %vm971_vm7 = vmor %vm969_vm6, %vm970_vm4  ;;  %v990_v31 = vand.u32 2147483648, %v917_v63  ;;  %vm984_vm10 = vweird.f32 %v917_v63 }
 0x186   : > { %v966_v26 = vsub.f32 1.0, %v965_v0  ;;  %v1011_v44 = vmul.f32 %v962_v14, %v2204_v60  ;;  %v988_v32 = vand.u32 2147483647, %v917_v63  ;;  %1331 = vmatpush.bf16.msra.mxu3 %v1655_v7  ;;  %v1651_v0 = vld [vmem:[#allocation2 + $0x8] sm:$0xff]  ;;  %v1043_v7 = vmul.f32 %v2247_v51, %v2127_v6 }
 0x187   : > { %v991_v39 = vor.u32 1.1754944e-38, %v990_v31 }
 0x188   : > { %v967_v4 = vmul.f32 %v1767_v62, %v966_v26  ;;  %vm989_vm13 = vcmp.eq.f32.partialorder %v988_v32, 8.507059e+37  ;;  %v1650_v26 = vld [vmem:[#allocation2] sm:$0xff]  ;;  %v1042_v32 = vmul.f32 %v2247_v51, %v2116_v53 }
 0x18a   : > { %v1769_v10 = vpop.eup %1768  ;;  %v968_v11 = vadd.f32 %v1767_v62, %v967_v4  ;;  %1332 = vmatpush.bf16.msra.mxu3 %v1654_v52 }
 0x18b   : > { %v1771_v12 = vpop.eup %1770  ;;  %v918_v13 = vadd.f32 1.0, %v1769_v10 }
 0x18c   : > { %v972_v19 = vsel %vm971_vm7, %v1767_v62, %v968_v11  ;;  %v980_v16 = vmul.f32 %v1771_v12, %v917_v63  ;;  %vm985_vm9 = vweird.f32 %v1771_v12  ;;  %v1039_v63 = vmul.f32 %v2247_v51, %v2089_v27 }
 0x18d   : > { %1772 = vrcp.f32 %v918_v13  ;;  %v977_v20 = vsel %vm974_vm8, %v976_v15, %v972_v19  ;;  %vm986_vm11 = vmor %vm984_vm10, %vm985_vm9  ;;  %v1005_v17 = vand.u32 2147483648, %v918_v13  ;;  %v1003_v60 = vand.u32 2147483647, %v918_v13 }
 0x18e   : > { %v1012_v21 = vmul.f32 %v977_v20, %v2210_v8  ;;  %v981_v56 = vsub.f32 1.0, %v980_v16  ;;  %vm999_vm14 = vweird.f32 %v918_v13  ;;  %1333 = vmatpush.bf16.msra.mxu3 %v1653_v55  ;;  %v1041_v19 = vmul.f32 %v2247_v51, %v2111_v45 }
 0x18f   : > { %v1006_v41 = vor.u32 1.1754944e-38, %v1005_v17  ;;  %vm1004_vm0 = vcmp.eq.f32.partialorder %v1003_v60, 8.507059e+37 }
 0x190   : > { %v1032_v24 = vpack.c.bf16 %v1012_v21, %v1011_v44  ;;  %v982_v25 = vmul.f32 %v1771_v12, %v981_v56 }
 0x192   : > { %1105 = vmatmul.bf16.gmra.mxu2 %v1032_v24  ;;  %v983_v29 = vadd.f32 %v1771_v12, %v982_v25  ;;  %1334 = vmatpush.bf16.msra.mxu3 %v1652_v59 }
 0x193   : > { %v1773_v28 = vpop.eup %1772 }
 0x194   : > { %v995_v30 = vmul.f32 %v1773_v28, %v918_v13  ;;  %v987_v35 = vsel %vm986_vm11, %v1771_v12, %v983_v29  ;;  %vm1000_vm12 = vweird.f32 %v1773_v28 }
 0x195   : > { %v992_v40 = vsel %vm989_vm13, %v991_v39, %v987_v35  ;;  %vm1001_vm15 = vmor %vm999_vm14, %vm1000_vm12 }
 0x196   : > { %v996_v33 = vsub.f32 1.0, %v995_v30  ;;  %v1013_v47 = vmul.f32 %v992_v40, %v2219_v23  ;;  %v1038_v23 = vmul.f32 %v2247_v51, %v2068_v18  ;;  %1335 = vmatpush.bf16.msra.mxu3 %v1651_v0 }
 0x198   : > { %v997_v37 = vmul.f32 %v1773_v28, %v996_v33 }
 0x19a   : > { %v998_v8 = vadd.f32 %v1773_v28, %v997_v37  ;;  %1336 = vmatpush.bf16.msra.mxu3 %v1650_v26 }
 0x19c   : > { %v1002_v43 = vsel %vm1001_vm15, %v1773_v28, %v998_v8 }
 0x19d   : > { %v1007_v46 = vsel %vm1004_vm0, %v1006_v41, %v1002_v43 }
 0x19e   : > { %v1014_v48 = vmul.f32 %v1007_v46, %v2232_v36  ;;  %v2254_v36 = vld [vmem:[%s2376_s10] ss:$0 sm:$0xff] }
 0x1a0   : > { %v1033_v49 = vpack.c.bf16 %v1014_v48, %v1013_v47 }
 0x1a2   : > { %1110 = vmatmul.bf16.gmra.mxu2 %v1033_v49 }
 0x205   : > { %v1101_v54 = vpop.f32.mrf.mxu2 }
 0x206   : > { %v1102_v57 = vadd.f32 %v1101_v54, %v1038_v23 }
 0x208   : > { %v2257_v58 = vadd.f32 %v2254_v36, %v1102_v57 }
 0x20a   : > { %v1586_v61 = vmul.f32 -1.702, %v2257_v58 }
 0x20c   : > { %v1138_v62 = vmul.f32 1.442695, %v1586_v61 }
 0x20d   : > { %v1103_v1 = vpop.f32.mrf.mxu2 }
 0x20e   : > { %1774 = vpow2.f32 %v1138_v62  ;;  %v1104_v38 = vadd.f32 %v1103_v1, %v1039_v63 }
 0x210   : > { %v2263_v42 = vadd.f32 %v2254_v36, %v1104_v38 }
 0x212   : > { %v1587_v2 = vmul.f32 -1.702, %v2263_v42 }
 0x214   : > { %v1775_v3 = vpop.eup %1774  ;;  %v1140_v4 = vmul.f32 1.442695, %v1587_v2 }
 0x215   : > { %v1150_v9 = vadd.f32 1.0, %v1775_v3  ;;  %v1106_v10 = vpop.f32.mrf.mxu2 }
 0x216   : > { %1776 = vpow2.f32 %v1140_v4  ;;  %v1107_v11 = vadd.f32 %v1106_v10, %v1040_v5 }
 0x217   : > { %1778 = vrcp.f32 %v1150_v9  ;;  %v1167_v8 = vand.u32 2147483648, %v1150_v9  ;;  %vm1161_vm2 = vweird.f32 %v1150_v9  ;;  %v1165_v41 = vand.u32 2147483647, %v1150_v9 }
 0x218   : > { %v2269_v12 = vadd.f32 %v2254_v36, %v1107_v11 }
 0x219   : > { %v1168_v52 = vor.u32 1.1754944e-38, %v1167_v8  ;;  %vm1166_vm5 = vcmp.eq.f32.partialorder %v1165_v41, 8.507059e+37 }
 0x21a   : > { %v1588_v13 = vmul.f32 -1.702, %v2269_v12 }
 0x21c   : > { %v1777_v14 = vpop.eup %1776  ;;  %v1142_v15 = vmul.f32 1.442695, %v1588_v13 }
 0x21d   : > { %v1779_v16 = vpop.eup %1778  ;;  %v1151_v20 = vadd.f32 1.0, %v1777_v14  ;;  %v1108_v44 = vpop.f32.mrf.mxu2 }
 0x21e   : > { %1780 = vpow2.f32 %v1142_v15  ;;  %v1109_v21 = vadd.f32 %v1108_v44, %v1041_v19  ;;  %v1157_v56 = vmul.f32 %v1779_v16, %v1150_v9  ;;  %vm1162_vm1 = vweird.f32 %v1779_v16 }
 0x21f   : > { %1782 = vrcp.f32 %v1151_v20  ;;  %vm2286_vm3 = vmor %vm1161_vm2, %vm1162_vm1  ;;  %v1180_v47 = vand.u32 2147483647, %v1151_v20  ;;  %v1182_v48 = vand.u32 2147483648, %v1151_v20  ;;  %vm1176_vm6 = vweird.f32 %v1151_v20 }
 0x220   : > { %v2275_v24 = vadd.f32 %v2254_v36, %v1109_v21  ;;  %v1158_v25 = vsub.f32 1.0, %v1157_v56 }
 0x221   : > { %vm1181_vm8 = vcmp.eq.f32.partialorder %v1180_v47, 8.507059e+37  ;;  %v1183_v63 = vor.u32 1.1754944e-38, %v1182_v48 }
 0x222   : > { %v1589_v28 = vmul.f32 -1.702, %v2275_v24  ;;  %v1159_v29 = vmul.f32 %v1779_v16, %v1158_v25 }
 0x224   : > { %v1781_v30 = vpop.eup %1780  ;;  %v1144_v31 = vmul.f32 1.442695, %v1589_v28  ;;  %v1160_v60 = vadd.f32 %v1779_v16, %v1159_v29 }
 0x225   : > { %v1783_v33 = vpop.eup %1782  ;;  %v2280_v17 = vadd.f32 1.0, %v1781_v30  ;;  %v1111_v35 = vpop.f32.mrf.mxu2 }
 0x226   : > { %1784 = vpow2.f32 %v1144_v31  ;;  %v1112_v37 = vadd.f32 %v1111_v35, %v1042_v32  ;;  %v1172_v39 = vmul.f32 %v1783_v33, %v1151_v20  ;;  %v1164_v50 = vsel %vm2286_vm3, %v1779_v16, %v1160_v60 }
 0x227   : > { %1786 = vrcp.f32 %v2280_v17  ;;  %vm1177_vm4 = vweird.f32 %v1783_v33  ;;  %v1169_v62 = vsel %vm1166_vm5, %v1168_v52, %v1164_v50  ;;  %vm1191_vm10 = vweird.f32 %v2280_v17 }
 0x228   : > { %v2284_v40 = vadd.f32 %v2254_v36, %v1112_v37  ;;  %v1173_v43 = vsub.f32 1.0, %v1172_v39  ;;  %vm1178_vm7 = vmor %vm1176_vm6, %vm1177_vm4  ;;  %v1246_v2 = vmul.f32 %v1169_v62, %v2257_v58  ;;  %v1195_v58 = vand.u32 2147483647, %v2280_v17 }
 0x22a   : > { %v1590_v49 = vmul.f32 -1.702, %v2284_v40  ;;  %v1174_v22 = vmul.f32 %v1783_v33, %v1173_v43  ;;  %vm1196_vm13 = vcmp.eq.f32.partialorder %v1195_v58, 8.507059e+37 }
 0x22c   : > { %v1785_v23 = vpop.eup %1784  ;;  %v1146_v54 = vmul.f32 1.442695, %v1590_v49  ;;  %v1175_v55 = vadd.f32 %v1783_v33, %v1174_v22 }
 0x22d   : > { %v1787_v57 = vpop.eup %1786  ;;  %v1153_v59 = vadd.f32 1.0, %v1785_v23  ;;  %v1113_v61 = vpop.f32.mrf.mxu2 }
 0x22e   : > { %1788 = vpow2.f32 %v1146_v54  ;;  %v1114_v1 = vadd.f32 %v1113_v61, %v1043_v7  ;;  %v1179_v0 = vsel %vm1178_vm7, %v1783_v33, %v1175_v55  ;;  %v1187_v38 = vmul.f32 %v1787_v57, %v2280_v17 }
 0x22f   : > { %1790 = vrcp.f32 %v1153_v59  ;;  %v1184_v51 = vsel %vm1181_vm8, %v1183_v63, %v1179_v0  ;;  %vm1192_vm9 = vweird.f32 %v1787_v57  ;;  %v1212_v20 = vand.u32 2147483648, %v1153_v59  ;;  %v1724_v0 = vld [vmem:[%s2378_s12] ss:$0 sm:$0xff] }
 0x230   : > { %v2297_v26 = vadd.f32 %v2254_v36, %v1114_v1  ;;  %v1247_v3 = vmul.f32 %v1184_v51, %v2263_v42  ;;  %v1188_v4 = vsub.f32 1.0, %v1187_v38  ;;  %v1197_v36 = vand.u32 2147483648, %v2280_v17  ;;  %vm1193_vm11 = vmor %vm1191_vm10, %vm1192_vm9  ;;  %v1725_v51 = vld [vmem:[%s2379_s13] ss:$0 sm:$0xff] }
 0x231   : > { %v1210_v56 = vand.u32 2147483647, %v1153_v59  ;;  %vm1206_vm14 = vweird.f32 %v1153_v59  ;;  %v1213_v33 = vor.u32 1.1754944e-38, %v1212_v20  ;;  %v1275_v38 = vmul.f32 %v1724_v0, %v2068_v18 }
 0x232   : > { %v1591_v5 = vmul.f32 -1.702, %v2297_v26  ;;  %v1268_v9 = vpack.c.bf16 %v1247_v3, %v1246_v2  ;;  %v1189_v10 = vmul.f32 %v1787_v57, %v1188_v4  ;;  %v1198_v25 = vor.u32 1.1754944e-38, %v1197_v36 }
 0x233   : > { %vm1211_vm0 = vcmp.eq.f32.partialorder %v1210_v56, 8.507059e+37 }
 0x234   : > { %v1789_v11 = vpop.eup %1788  ;;  %v1148_v13 = vmul.f32 1.442695, %v1591_v5  ;;  %1337 = vmatmul.bf16.vlgmr.msra.gmra.mxu3 %v1268_v9  ;;  %v1190_v19 = vadd.f32 %v1787_v57, %v1189_v10  ;;  %v1277_v9 = vmul.f32 %v1724_v0, %v2097_v34  ;;  %v1280_v34 = vmul.f32 %v1724_v0, %v2127_v6 }
 0x235   : > { %v1791_v14 = vpop.eup %1790  ;;  %v1154_v15 = vadd.f32 1.0, %v1789_v11 }
 0x236   : > { %1792 = vpow2.f32 %v1148_v13  ;;  %v1202_v16 = vmul.f32 %v1791_v14, %v1153_v59  ;;  %v1194_v44 = vsel %vm1193_vm11, %v1787_v57, %v1190_v19  ;;  %vm1207_vm12 = vweird.f32 %v1791_v14 }
 0x237   : > { %1794 = vrcp.f32 %v1154_v15  ;;  %v1199_v32 = vsel %vm1196_vm13, %v1198_v25, %v1194_v44  ;;  %vm1208_vm15 = vmor %vm1206_vm14, %vm1207_vm12  ;;  %v1227_v49 = vand.u32 2147483648, %v1154_v15  ;;  %vm1221_vm2 = vweird.f32 %v1154_v15 }
 0x238   : > { %v1203_v42 = vsub.f32 1.0, %v1202_v16  ;;  %v1248_v60 = vmul.f32 %v1199_v32, %v2269_v12  ;;  %v1225_v50 = vand.u32 2147483647, %v1154_v15 }
 0x23a   : > { %v1204_v21 = vmul.f32 %v1791_v14, %v1203_v42  ;;  %vm1226_vm5 = vcmp.eq.f32.partialorder %v1225_v50, 8.507059e+37 }
 0x23c   : > { %v1793_v28 = vpop.eup %1792  ;;  %v1205_v29 = vadd.f32 %v1791_v14, %v1204_v21 }
 0x23d   : > { %v1795_v30 = vpop.eup %1794  ;;  %v1155_v31 = vadd.f32 1.0, %v1793_v28 }
 0x23e   : > { %v1209_v35 = vsel %vm1208_vm15, %v1791_v14, %v1205_v29  ;;  %v1217_v17 = vmul.f32 %v1795_v30, %v1154_v15  ;;  %vm1222_vm1 = vweird.f32 %v1795_v30  ;;  %v1278_v14 = vmul.f32 %v1724_v0, %v2111_v45 }
 0x23f   : > { %1796 = vrcp.f32 %v1155_v31  ;;  %v1214_v37 = vsel %vm1211_vm0, %v1213_v33, %v1209_v35  ;;  %vm1223_vm3 = vmor %vm1221_vm2, %vm1222_vm1  ;;  %v1242_v7 = vand.u32 2147483648, %v1155_v31  ;;  %v1240_v12 = vand.u32 2147483647, %v1155_v31 }
 0x240   : > { %v1249_v39 = vmul.f32 %v1214_v37, %v2275_v24  ;;  %v1218_v8 = vsub.f32 1.0, %v1217_v17  ;;  %v1228_v24 = vor.u32 1.1754944e-38, %v1227_v49  ;;  %vm1236_vm6 = vweird.f32 %v1155_v31 }
 0x241   : > { %v1243_v57 = vor.u32 1.1754944e-38, %v1242_v7  ;;  %vm1241_vm8 = vcmp.eq.f32.partialorder %v1240_v12, 8.507059e+37 }
 0x242   : > { %v1269_v41 = vpack.c.bf16 %v1249_v39, %v1248_v60  ;;  %v1219_v43 = vmul.f32 %v1795_v30, %v1218_v8 }
 0x244   : > { %1342 = vmatmul.bf16.gmra.mxu3 %v1269_v41  ;;  %v1220_v47 = vadd.f32 %v1795_v30, %v1219_v43 }
 0x245   : > { %v1797_v46 = vpop.eup %1796 }
 0x246   : > { %v1232_v48 = vmul.f32 %v1797_v46, %v1155_v31  ;;  %v1224_v52 = vsel %vm1223_vm3, %v1795_v30, %v1220_v47  ;;  %vm1237_vm4 = vweird.f32 %v1797_v46 }
 0x247   : > { %v1229_v55 = vsel %vm1226_vm5, %v1228_v24, %v1224_v52  ;;  %vm1238_vm7 = vmor %vm1236_vm6, %vm1237_vm4 }
 0x248   : > { %v1233_v22 = vsub.f32 1.0, %v1232_v48  ;;  %v1250_v62 = vmul.f32 %v1229_v55, %v2284_v40 }
 0x24a   : > { %v1234_v23 = vmul.f32 %v1797_v46, %v1233_v22 }
 0x24c   : > { %v1235_v54 = vadd.f32 %v1797_v46, %v1234_v23 }
 0x24e   : > { %v1239_v59 = vsel %vm1238_vm7, %v1797_v46, %v1235_v54 }
 0x24f   : > { %v1244_v61 = vsel %vm1241_vm8, %v1243_v57, %v1239_v59 }
 0x250   : > { %v1251_v63 = vmul.f32 %v1244_v61, %v2297_v26  ;;  %v1276_v26 = vmul.f32 %v1724_v0, %v2089_v27  ;;  %v1279_v27 = vmul.f32 %v1724_v0, %v2116_v53 }
 0x252   : > { %v1270_v1 = vpack.c.bf16 %v1251_v63, %v1250_v62 }
 0x254   : > { %1347 = vmatmul.bf16.gmra.mxu3 %v1270_v1 }
 0x2b7   : > { %v1338_v2 = vpop.f32.mrf.mxu3 }
 0x2b8   : > { %v1339_v3 = vadd.f32 %v1338_v2, %v1275_v38 }
 0x2ba   : > { %v1357_v40 = vadd.f32 %v1725_v51, %v1339_v3 }
 0x2bc   : > { %1363 = vst [vmem:[%s2319_s20] sm:$0xff] %v1357_v40 }
 0x2bf   : > { %v1340_v4 = vpop.f32.mrf.mxu3 }
 0x2c0   : > { %v1341_v5 = vadd.f32 %v1340_v4, %v1276_v26 }
 0x2c2   : > { %v1358_v18 = vadd.f32 %v1725_v51, %v1341_v5 }
 0x2c4   : > { %1364 = vst [vmem:[%s2319_s20 + $0x8] sm:$0xff] %v1358_v18 }
 0x2c7   : > { %v1343_v10 = vpop.f32.mrf.mxu3 }
 0x2c8   : > { %v1344_v11 = vadd.f32 %v1343_v10, %v1277_v9 }
 0x2ca   : > { %v1359_v13 = vadd.f32 %v1725_v51, %v1344_v11 }
 0x2cc   : > { %1365 = vst [vmem:[%s2319_s20 + $0x10] sm:$0xff] %v1359_v13 }
 0x2cf   : > { %v1345_v15 = vpop.f32.mrf.mxu3 }
 0x2d0   : > { %v1346_v19 = vadd.f32 %v1345_v15, %v1278_v14 }
 0x2d2   : > { %v1360_v16 = vadd.f32 %v1725_v51, %v1346_v19 }
 0x2d4   : > { %1366 = vst [vmem:[%s2319_s20 + $0x18] sm:$0xff] %v1360_v16 }
 0x2d7   : > { %v1348_v36 = vpop.f32.mrf.mxu3 }
 0x2d8   : > { %v1349_v58 = vadd.f32 %v1348_v36, %v1279_v27 }
 0x2da   : > { %v1361_v42 = vadd.f32 %v1725_v51, %v1349_v58 }
 0x2dc   : > { %1367 = vst [vmem:[%s2319_s20 + $0x20] sm:$0xff] %v1361_v42 }
 0x2df   : > { %v1350_v45 = vpop.f32.mrf.mxu3 }
 0x2e0   : > { %v1351_v20 = vadd.f32 %v1350_v45, %v1280_v34 }
 0x2e2   : > { %v1362_v44 = vadd.f32 %v1725_v51, %v1351_v20 }
 0x2e4   : > { %1368 = vst [vmem:[%s2319_s20 + $0x28] sm:$0xff] %v1362_v44 }
 0x2e5   : > { %1855 = shalt.err (!%p1852_p8)
}
 0x2e6   : > { %s1900_s15 = smov 128   ;;  %s1901_s20 = smov 8  }
 0x2e7   : > { %1664 = dma.vmem_to_hbm [thread:$0]  (%p2015_p5), %s1383_s19, 768, %s1385_s25, %s1370_s21, %s1900_s15, %s1900_s15, %s1901_s20  }
 0x2e8 PF: > { %p1676_p9 = scmp.ge.s32.totalorder %s1894_s16, 2  ;;  %s1399_s28 = sand.u32 1, %s1882_s29  }
 0x2e9   : > { %s1400_s26 = scalar_lea.sflag [#allocation4], %s1399_s28 }
 0x2ea   : > { %p1671_p10 = pnand %p1676_p9, %p2019_p6 }
 0x2ec   : > { %p1672_p11 = pneg %p1671_p10 }
 0x2ee   : > { %1877 = dma.done.wait (%p1672_p11), %s1400_s26, 768  }
 0x2ef   : > { %1879 = vsyncadd (%p1672_p11), %s1400_s26, 4294966528  ;;  %s2397_s16 = sld [smem:[#allocation9_spill]]  ;;  %s2400_s29 = smov %s1886_s30 }
 0x2f0   : > { %s2398_s17 = sld [smem:[#allocation8_spill]] }
 0x2f1   : > { %s2399_s15 = sld [smem:[#allocation10_spill]] }
 0x2f5   : > { %p25_p12 = scmp.ge.s32.totalorder %s2397_s16, 4  }
 0x2f6   : > { %s2401_s30 = smov %s2398_s17 }
 0x2f7   :  { %27 = sbr.rel (!%p25_p12) target bundleno = 6 (0x6), region = 119 }
 0x2fc   :  { %1406 = vsyncpa [#allocation3], 1 }
 0x2fd   :  { %1408 = vsyncpa [#allocation3 + $0x1], 1 }
 0x2fe   :  { %1409 = vsyncpa [#allocation4], 1 }
 0x2ff   :  { %1411 = vsyncpa [#allocation4 + $0x1], 1 }

</bundles_post_ra>
